<compile_context>
chip_gen: v7x
topology: tpu7x:2x2x1
jax: 0.10.0
libtpu: 0.0.40
codegen_flags: <defaults>
</compile_context>

<pallas_src>
import functools

import jax
import jax.numpy as jnp
from jax.experimental import pallas as pl
from jax.experimental.pallas import tpu as pltpu

DIM_EMB = 96
DIM_HID = 4 * DIM_EMB          # 384


def _round_up(x, m):
    return (x + m - 1) // m * m


def _ffw_kernel(x_ref, w1_ref, b1_ref, w2_ref, b2_ref, o_ref):
    # x_ref : (tm, DIM_EMB)      x.dtype (f32 or bf16)
    # w1_ref: (DIM_EMB, DIM_HID) bf16   (resident across the grid)
    # b1_ref: (1, DIM_HID)       f32
    # w2_ref: (DIM_HID, DIM_EMB) bf16   (resident across the grid)
    # b2_ref: (1, DIM_EMB)       f32
    # o_ref : (tm, DIM_EMB)      x.dtype
    x_bf = x_ref[...].astype(jnp.bfloat16)    # MXU operand; VPU math stays f32

    # Single contractions (no hidden-dim chunk loop): the MXU accumulates
    # internally in f32, no VPU accumulator traffic, better cadence on the
    # 256-wide MXU of v6e/v7x.
    h = jnp.dot(x_bf, w1_ref[...], preferred_element_type=jnp.float32)
    h = jnp.maximum(h + b1_ref[...], 0.0)     # bias + ReLU in f32

    y = jnp.dot(h.astype(jnp.bfloat16), w2_ref[...],
                preferred_element_type=jnp.float32)

    # Dropout(p=0.2): eval-mode identity.
    o_ref[...] = (y + b2_ref[...]).astype(o_ref.dtype)


@functools.partial(jax.jit, static_argnames=("tm",))
def feedforward(x, w1, b1, w2, b2, *, tm=4096):
    """x: [B, T, DIM_EMB] -> [B, T, DIM_EMB] (dtype follows x)."""
    B, T, D = x.shape
    assert D == DIM_EMB
    M = B * T
    x2 = x.reshape(M, D)                      # free view, no HBM pass

    # Row tile: large enough to amortize the ~0.35 us/step pipeline overhead,
    # but clamp so the grid has >= 4 steps when M allows it (each of v7x's two
    # TensorCores then gets >= 2 pipelined steps).  Ragged last block is
    # handled by Pallas output masking — no row padding / slicing round-trip.
    tm_eff = max(8, min(tm, _round_up(pl.cdiv(M, 4), 8)))
    grid = (pl.cdiv(M, tm_eff),)

    # Weights stay resident in VMEM; store them bf16 (MXU bf16 path, half the
    # resident footprint).  Biases stay f32 for the VPU-side math.
    w1b = w1.astype(jnp.bfloat16)
    w2b = w2.astype(jnp.bfloat16)
    b1f = b1.astype(jnp.float32)
    b2f = b2.astype(jnp.float32)

    bytes_accessed = (x2.size * x2.dtype.itemsize          # x read
                      + M * D * x.dtype.itemsize           # out write
                      + w1b.size * 2 + w2b.size * 2        # bf16 weights
                      + b1f.size * 4 + b2f.size * 4)       # f32 biases
    cost = pl.CostEstimate(flops=4 * M * DIM_EMB * DIM_HID,
                           transcendentals=0,
                           bytes_accessed=int(bytes_accessed))

    out = pl.pallas_call(
        _ffw_kernel,
        out_shape=jax.ShapeDtypeStruct((M, D), x.dtype),
        grid_spec=pltpu.PrefetchScalarGridSpec(
            num_scalar_prefetch=0,
            grid=grid,
            in_specs=[
                pl.BlockSpec((tm_eff, D), lambda i: (i, 0)),          # x tile
                pl.BlockSpec((DIM_EMB, DIM_HID), lambda i: (0, 0)),   # w1 (resident)
                pl.BlockSpec((1, DIM_HID), lambda i: (0, 0)),         # b1
                pl.BlockSpec((DIM_HID, DIM_EMB), lambda i: (0, 0)),   # w2 (resident)
                pl.BlockSpec((1, DIM_EMB), lambda i: (0, 0)),         # b2
            ],
            out_specs=pl.BlockSpec((tm_eff, D), lambda i: (i, 0)),
        ),
        compiler_params=pltpu.CompilerParams(
            dimension_semantics=("parallel",),
            # ~18 MB working set at tm=4096 (x/out double-buffered tiles,
            # (tm,384) f32 h, bf16 temporaries, resident weights): above v5e's
            # 16 MiB default scoped VMEM, comfortably below v7x's 64 MiB
            # physical.  48 MiB is safe on v5e/v6e/v7x.
            vmem_limit_bytes=48 * 1024 * 1024),
        cost_estimate=cost,
    )(x2, w1b, b1f, w2b, b2f)

    return out.reshape(B, T, D)


def init_params(key, dtype=jnp.float32):
    """Deterministic init matching nn.Linear shapes (Kaiming-uniform style)."""
    k1, k2, k3, k4 = jax.random.split(key, 4)
    bound1 = 1.0 / (DIM_EMB ** 0.5)
    bound2 = 1.0 / (DIM_HID ** 0.5)
    w1 = jax.random.uniform(k1, (DIM_EMB, DIM_HID), dtype, -bound1, bound1)
    b1 = jax.random.uniform(k2, (1, DIM_HID), dtype, -bound1, bound1)
    w2 = jax.random.uniform(k3, (DIM_HID, DIM_EMB), dtype, -bound2, bound2)
    b2 = jax.random.uniform(k4, (1, DIM_EMB), dtype, -bound2, bound2)
    return w1, b1, w2, b2


def feedforward_ref_f32(x, w1, b1, w2, b2):
    h = jnp.maximum(x @ w1 + b1[0], 0.0)
    return h @ w2 + b2[0]


def feedforward_ref_bf16(x, w1, b1, w2, b2):
    """Reference using the same bf16-operand / f32-accumulate math as the kernel."""
    bf = jnp.bfloat16
    h = jnp.einsum("btk,kh->bth", x.astype(bf), w1.astype(bf),
                   preferred_element_type=jnp.float32) + b1[0]
    h = jnp.maximum(h, 0.0)
    return jnp.einsum("bth,hd->btd", h.astype(bf), w2.astype(bf),
                      preferred_element_type=jnp.float32) + b2[0]


if __name__ == "__main__":
    key = jax.random.PRNGKey(0)
    kx, kp = jax.random.split(key)

    B, T = 2, 8   # small transformer-style batch / sequence
    x = jax.random.normal(kx, (B, T, DIM_EMB), dtype=jnp.float32)
    w1, b1, w2, b2 = init_params(kp)

    y = jax.block_until_ready(feedforward(x, w1, b1, w2, b2))

    y_bf = feedforward_ref_bf16(x, w1, b1, w2, b2)
    y_f32 = feedforward_ref_f32(x, w1, b1, w2, b2)

    assert y.shape == (B, T, DIM_EMB)
    # Exact-math match (modulo accumulation order) against the bf16-operand ref.
    assert jnp.allclose(y, y_bf, atol=1e-3, rtol=1e-3)
    # Loose match against the pure-f32 reference (bf16 operand rounding).
    assert jnp.allclose(y, y_f32, atol=2.5e-2, rtol=2.5e-2)

    print("KERNEL_OK")
</pallas_src>

<mosaic_0001>
module attributes {stable_mosaic.version = 11 : i64} {
  func.func @_ffw_kernel(%arg0: i32, %arg1: memref<8x96xf32, #tpu.memory_space<vmem>>, %arg2: memref<96x384xbf16, #tpu.memory_space<vmem>>, %arg3: memref<1x384xf32, #tpu.memory_space<vmem>>, %arg4: memref<384x96xbf16, #tpu.memory_space<vmem>>, %arg5: memref<1x96xf32, #tpu.memory_space<vmem>>, %arg6: memref<8x96xf32, #tpu.memory_space<vmem>>) attributes {dimension_semantics = [#tpu.dimension_semantics<parallel>], iteration_bounds = array<i64: 2>, scalar_prefetch = 0 : i64, scratch_operands = 0 : i64, tpu.core_type = #tpu.core_type<tc>, window_params = [{transform_indices = @transform_0, window_bounds = array<i64: 8, 96>}, {pipeline_mode = #tpu.pipeline_mode<synchronous>, transform_indices = @transform_1, window_bounds = array<i64: 96, 384>}, {pipeline_mode = #tpu.pipeline_mode<synchronous>, transform_indices = @transform_2, window_bounds = array<i64: 1, 384>}, {pipeline_mode = #tpu.pipeline_mode<synchronous>, transform_indices = @transform_3, window_bounds = array<i64: 384, 96>}, {pipeline_mode = #tpu.pipeline_mode<synchronous>, transform_indices = @transform_4, window_bounds = array<i64: 1, 96>}, {transform_indices = @transform_5, window_bounds = array<i64: 8, 96>}]} {
    %c0 = arith.constant 0 : index
    %c0_0 = arith.constant 0 : index
    %0 = vector.load %arg1[%c0, %c0_0] : memref<8x96xf32, #tpu.memory_space<vmem>>, vector<8x96xf32>
    %1 = arith.truncf %0 : vector<8x96xf32> to vector<8x96xbf16>
    %c0_1 = arith.constant 0 : index
    %c0_2 = arith.constant 0 : index
    %2 = vector.load %arg2[%c0_1, %c0_2] : memref<96x384xbf16, #tpu.memory_space<vmem>>, vector<96x384xbf16>
    %cst = arith.constant dense<0.000000e+00> : vector<8x384xf32>
    %3 = tpu.matmul %1, %2, %cst {dimension_numbers = #tpu.dot_dimension_numbers<[1], [0], [0], [1], [0, 0, 1, 1], [], []>} : vector<8x96xbf16>, vector<96x384xbf16>, vector<8x384xf32> -> vector<8x384xf32>
    %c0_3 = arith.constant 0 : index
    %c0_4 = arith.constant 0 : index
    %4 = vector.load %arg3[%c0_3, %c0_4] : memref<1x384xf32, #tpu.memory_space<vmem>>, vector<1x384xf32>
    %5 = vector.broadcast %4 : vector<1x384xf32> to vector<8x384xf32>
    %6 = arith.addf %3, %5 : vector<8x384xf32>
    %cst_5 = arith.constant 0.000000e+00 : f32
    %7 = vector.broadcast %cst_5 : f32 to vector<8x384xf32>
    %8 = arith.maximumf %6, %7 : vector<8x384xf32>
    %9 = arith.truncf %8 : vector<8x384xf32> to vector<8x384xbf16>
    %c0_6 = arith.constant 0 : index
    %c0_7 = arith.constant 0 : index
    %10 = vector.load %arg4[%c0_6, %c0_7] : memref<384x96xbf16, #tpu.memory_space<vmem>>, vector<384x96xbf16>
    %cst_8 = arith.constant dense<0.000000e+00> : vector<8x96xf32>
    %11 = tpu.matmul %9, %10, %cst_8 {dimension_numbers = #tpu.dot_dimension_numbers<[1], [0], [0], [1], [0, 0, 1, 1], [], []>} : vector<8x384xbf16>, vector<384x96xbf16>, vector<8x96xf32> -> vector<8x96xf32>
    %c0_9 = arith.constant 0 : index
    %c0_10 = arith.constant 0 : index
    %12 = vector.load %arg5[%c0_9, %c0_10] : memref<1x96xf32, #tpu.memory_space<vmem>>, vector<1x96xf32>
    %13 = vector.broadcast %12 : vector<1x96xf32> to vector<8x96xf32>
    %14 = arith.addf %11, %13 : vector<8x96xf32>
    %c0_11 = arith.constant 0 : index
    %c0_12 = arith.constant 0 : index
    %15 = vector.load %arg6[%c0_11, %c0_12] : memref<8x96xf32, #tpu.memory_space<vmem>>, vector<8x96xf32>
    tpu.vector_store %arg6[%c0_11, %c0_12], %14 {strides = array<i32>} : memref<8x96xf32, #tpu.memory_space<vmem>>, vector<8x96xf32>,
    return
  }
  func.func @transform_0(%arg0: i32) -> (i32, i32) {
    %c0_i32 = arith.constant 0 : i32
    %c0_i32_0 = arith.constant 0 : i32
    return %arg0, %c0_i32 : i32, i32
  }
  func.func @transform_1(%arg0: i32) -> (i32, i32) {
    %c0_i32 = arith.constant 0 : i32
    %c0_i32_0 = arith.constant 0 : i32
    %c0_i32_1 = arith.constant 0 : i32
    return %c0_i32, %c0_i32_0 : i32, i32
  }
  func.func @transform_2(%arg0: i32) -> (i32, i32) {
    %c0_i32 = arith.constant 0 : i32
    %c0_i32_0 = arith.constant 0 : i32
    %c0_i32_1 = arith.constant 0 : i32
    return %c0_i32, %c0_i32_0 : i32, i32
  }
  func.func @transform_3(%arg0: i32) -> (i32, i32) {
    %c0_i32 = arith.constant 0 : i32
    %c0_i32_0 = arith.constant 0 : i32
    %c0_i32_1 = arith.constant 0 : i32
    return %c0_i32, %c0_i32_0 : i32, i32
  }
  func.func @transform_4(%arg0: i32) -> (i32, i32) {
    %c0_i32 = arith.constant 0 : i32
    %c0_i32_0 = arith.constant 0 : i32
    %c0_i32_1 = arith.constant 0 : i32
    return %c0_i32, %c0_i32_0 : i32, i32
  }
  func.func @transform_5(%arg0: i32) -> (i32, i32) {
    %c0_i32 = arith.constant 0 : i32
    %c0_i32_0 = arith.constant 0 : i32
    return %arg0, %c0_i32 : i32, i32
  }
}

</mosaic_0001>

<bundles_post_ra>
// kernel: feedforward.1
= control target key start
LH: loop header
LB: loop body
LE: loop exit
PB: predicated region body
PF: predicated region fallthrough
CT: control target
= control target key end

     0   :  { %10 = vsyncpa [#allocation3], 0  ;;  %s1374_s0 = inlined_call_operand.vmem [shape: f32[16,96], index: 0, kind: input, shape index: {}]   ;;  %s1375_s1 = inlined_call_operand.vmem [shape: bf16[96,384], index: 1, kind: input, shape index: {}]   ;;  %s1376_s2 = inlined_call_operand.vmem [shape: f32[1,384], index: 2, kind: input, shape index: {}]   ;;  %s1377_s3 = inlined_call_operand.vmem [shape: bf16[384,96], index: 3, kind: input, shape index: {}]   ;;  %s1378_s4 = inlined_call_operand.vmem [shape: f32[1,96], index: 4, kind: input, shape index: {}]   ;;  %s1379_s5 = inlined_call_operand.hbm [shape: f32[16,96], index: 5, kind: output, shape index: {}]  }
   0x1   :  { %12 = vsyncpa [#allocation3 + $0x1], 0  ;;  %s1121_s18 = smov 0   ;;  %s1123_s19 = smov 0  }
   0x2   :  { %s1125_s20 = smov 0   ;;  %s1127_s21 = smov 0  }
   0x3 LB: > { %s1142_s22 = sadd.s32 4294967295, %s1085_s21   ;;  %s804_s23 = sadd.s32 4294967294, %s1085_s21   ;;  %s1085_s21 = sphi %s1127_s21, %s1385_s21   ;;  %s1081_s20 = sphi %s1125_s20, %s1384_s20   ;;  %s1077_s19 = sphi %s1123_s19, %s1383_s19   ;;  %s1073_s18 = sphi %s1121_s18, %s1382_s18  }
   0x4   : > { %s1146_s24 = sadd.s32 1, %s1085_s21   ;;  %s135_s25 = sadd.s32 1, %s1081_s20 }
   0x5   : > { %s132_s26 = ssub.s32 %s1085_s21, %s1146_s24  ;;  %p145_p0 = scmp.ne.s32.totalorder %s1081_s20, %s1077_s19 }
   0x6   : > { %p133_p1 = scmp.eq.s32.totalorder %s132_s26, 0  ;;  %p146_p2 = scmp.eq.s32.totalorder %s1142_s22, 1 }
   0x7   : > { %p151_p3 = scmp.ne.s32.totalorder %s1077_s19, %s1073_s18  ;;  %p152_p4 = scmp.eq.s32.totalorder %s804_s23, 1 }
   0x8   : > { %s1157_s27 = scalar_select %p133_p1, %s1081_s20, %s135_s25  }
   0x9   : > { %p1159_p5 = por %p146_p2, %p145_p0  ;;  %p1163_p6 = por %p152_p4, %p151_p3 }
   0xa   : > { %p807_p7 = scmp.ge.s32.totalorder %s1085_s21, 1  ;;  %p189_p8 = scmp.lt.s32.totalorder %s1085_s21, 3 }
   0xc   : > { %p190_p9 = pnand %p807_p7, %p189_p8 }
   0xd   : > { %v975_v0 = vld [vmem:[%s1375_s1 + $0x4] ss:$12 sps:$4 sm:$0xff] (!%p190_p9)   ;;  %v977_v1 = vld [vmem:[%s1375_s1] ss:$12 sps:$4 sm:$0xff] (!%p190_p9)   ;;  %v1087_v2 = vmov (!%p190_p9), 0.0   ;;  %v1088_v3 = vmov (!%p190_p9), 0   ;;  %v249_v46 = vlaneseq (!%p190_p9) }
   0xe   : > { %193 = sbr.rel (%p190_p9) target bundleno = 492 (0x1ec), region = 40  ;;  %897 = vmatprep.subr.bf16.mxu1 (!%p190_p9), %v1087_v2  ;;  %396 = vmatprep.mubr.bf16.mxu0 (!%p190_p9), %v1088_v3  ;;  %p216_p10 = scmp.lt.s32.totalorder (!%p190_p9), %s1142_s22, 1  ;;  %v978_v4 = vld [vmem:[%s1375_s1 + $0x1c] ss:$12 sps:$4 sm:$0xff] (!%p190_p9)   ;;  %v980_v5 = vld [vmem:[%s1375_s1 + $0x18] ss:$12 sps:$4 sm:$0xff] (!%p190_p9)  }
   0xf   : > { %364 = vmatprep.subr.bf16.mxu0 (!%p190_p9), %v975_v0  ;;  %v981_v6 = vld [vmem:[%s1375_s1 + $0x8] ss:$12 sps:$4 sm:$0xff] (!%p190_p9)   ;;  %v985_v8 = vld [vmem:[%s1375_s1 + $0x20] ss:$12 sps:$4 sm:$0xff] (!%p190_p9)   ;;  %vm1089_vm0 = vmmov (!%p190_p9), 0   ;;  %vm360_vm1 = vcmask (!%p190_p9), 785408  }
  0x10   : > { %365 = vmatpush1.bf16.msra.mxu0 (!%p190_p9), %v977_v1  ;;  %v982_v7 = vld [vmem:[%s1375_s1 + $0x34] ss:$12 sps:$4 sm:$0xff] (!%p190_p9)   ;;  %898 = vmatpush3.bf16.msra.mxu1 (!%p190_p9), %v981_v6  ;;  %v984_v9 = vld [vmem:[%s1375_s1 + $0x30] ss:$12 sps:$4 sm:$0xff] (!%p190_p9)   ;;  %v986_v10 = vld [vmem:[%s1375_s1 + $0x4c] ss:$12 sps:$4 sm:$0xff] (!%p190_p9)  }
  0x11   : > { %366 = vmatprep.subr.bf16.mxu0 (!%p190_p9), %v978_v4  ;;  %909 = vmatprep.mubr.msk.bf16.mxu1 (!%p190_p9), %vm1089_vm0, %v1087_v2  ;;  %v989_v11 = vld [vmem:[%s1375_s1 + $0x38] ss:$12 sps:$4 sm:$0xff] (!%p190_p9)   ;;  %v988_v12 = vld [vmem:[%s1375_s1 + $0x48] ss:$12 sps:$4 sm:$0xff] (!%p190_p9)   ;;  %v993_v14 = vld [vmem:[%s1375_s1 + $0x50] ss:$12 sps:$4 sm:$0xff] (!%p190_p9)  }
  0x12   : > { %899 = vmatprep.subr.bf16.mxu1 (!%p190_p9), %v1087_v2  ;;  %v990_v13 = vld [vmem:[%s1375_s1 + $0x64] ss:$12 sps:$4 sm:$0xff] (!%p190_p9)   ;;  %v992_v15 = vld [vmem:[%s1375_s1 + $0x60] ss:$12 sps:$4 sm:$0xff] (!%p190_p9)   ;;  %v994_v16 = vld [vmem:[%s1375_s1 + $0x7c] ss:$12 sps:$4 sm:$0xff] (!%p190_p9)  }
  0x13   : > { %v997_v17 = vld [vmem:[%s1375_s1 + $0x68] ss:$12 sps:$4 sm:$0xff] (!%p190_p9)   ;;  %v996_v18 = vld [vmem:[%s1375_s1 + $0x78] ss:$12 sps:$4 sm:$0xff] (!%p190_p9)   ;;  %v998_v21 = vld [vmem:[%s1375_s1 + $0x80] ss:$12 sps:$4 sm:$0xff] (!%p190_p9)  }
  0x14   : > { %367 = vmatpush1.bf16.msra.mxu0 (!%p190_p9), %v980_v5  ;;  %900 = vmatpush3.bf16.msra.mxu1 (!%p190_p9), %v985_v8  ;;  %v999_v20 = vld [vmem:[%s1377_s3 + $0x40] sm:$0xff] (!%p190_p9)   ;;  %v1002_v24 = vld [vmem:[%s1377_s3 + $0x48] sm:$0xff] (!%p190_p9)   ;;  %v1005_v27 = vld [vmem:[%s1377_s3 + $0x50] sm:$0xff] (!%p190_p9)   ;;  %v250_v47 = vshrl.u32 (!%p190_p9), %v249_v46, 7  ;;  %s213_s16 = sand.u32 (!%p190_p9), 1, %s1077_s19  }
  0x15   : > { %s217_s25 = scalar_select %p216_p10, %s1142_s22, 1  ;;  %368 = vmatprep.subr.bf16.mxu0 %v982_v7  ;;  %901 = vmatprep.subr.bf16.mxu1 %v1087_v2  ;;  %v1000_v23 = vld [vmem:[%s1377_s3] sm:$0xff]   ;;  %v1003_v26 = vld [vmem:[%s1377_s3 + $0x8] sm:$0xff]   ;;  %v1006_v29 = vld [vmem:[%s1377_s3 + $0x10] sm:$0xff]  }
  0x16   : > { %v1001_v25 = vld [vmem:[%s1377_s3 + $0x80] sm:$0xff]   ;;  %v1004_v28 = vld [vmem:[%s1377_s3 + $0x88] sm:$0xff]   ;;  %v1007_v30 = vld [vmem:[%s1377_s3 + $0x90] sm:$0xff]   ;;  %v251_v48 = vsub.s32 0, %v250_v47  ;;  %v255_v50 = vsub.s32 1, %v250_v47  ;;  %v259_v51 = vsub.s32 2, %v250_v47 }
  0x17   : > { %s809_s12 = sshll.u32 %s217_s25, 3  ;;  %v1008_v31 = vld [vmem:[%s1377_s3 + $0x58] sm:$0xff]   ;;  %v1011_v33 = vld [vmem:[%s1377_s3 + $0x60] sm:$0xff]   ;;  %v1014_v36 = vld [vmem:[%s1377_s3 + $0x68] sm:$0xff]   ;;  %s808_s17 = sshll.u32 %s213_s16, 3 }
  0x18   : > { %369 = vmatpush1.bf16.msra.mxu0 %v984_v9  ;;  %902 = vmatpush3.bf16.msra.mxu1 %v989_v11  ;;  %s219_s7 = scalar_lea.vmem %s1374_s0, %s809_s12  ;;  %v1009_v32 = vld [vmem:[%s1377_s3 + $0x18] sm:$0xff]   ;;  %v1012_v35 = vld [vmem:[%s1377_s3 + $0x20] sm:$0xff]   ;;  %v1015_v38 = vld [vmem:[%s1377_s3 + $0x28] sm:$0xff]   ;;  %s856_s25 = sshll.u32 %s1142_s22, 7 }
  0x19   : > { %370 = vmatprep.subr.bf16.mxu0 %v986_v10  ;;  %903 = vmatprep.subr.bf16.mxu1 %v1087_v2  ;;  %v221_v19 = vld [vmem:[%s219_s7] sm:$0xff]  ;;  %v1010_v34 = vld [vmem:[%s1377_s3 + $0x98] sm:$0xff]   ;;  %v1016_v39 = vld [vmem:[%s1377_s3 + $0xa8] sm:$0xff]   ;;  %s215_s30 = scalar_lea.vmem [#allocation2], %s808_s17  ;;  %s1331_s9 = scalar_lea.hbm %s1379_s5, %s856_s25 }
  0x1a   : > { %v222_v22 = vpack.c.bf16 %v221_v19, %v221_v19  ;;  %v1013_v37 = vld [vmem:[%s1377_s3 + $0xa0] sm:$0xff]   ;;  %v1017_v40 = vld [vmem:[%s1377_s3 + $0x70] sm:$0xff]   ;;  %v1020_v43 = vld [vmem:[%s1377_s3 + $0x78] sm:$0xff]   ;;  %s745_s6 = sshll.u32 %s215_s30, 4  ;;  %s732_s10 = scalar_lea.sflag [#allocation3], %s213_s16  ;;  %s1333_s6 = int_to_ptr.vmem [resolvable:$true] %s745_s6 }
  0x1b   : > { %v1018_v41 = vld [vmem:[%s1377_s3 + $0x30] sm:$0xff]   ;;  %v1021_v44 = vld [vmem:[%s1377_s3 + $0x38] sm:$0xff]   ;;  %v247_v49 = vld [vmem:[%s1376_s2] sm:$0x7]  ;;  %s1023_s11 = scalar_lea.vmem %s1333_s6, 128  ;;  %s1090_s22 = smov [#allocation2]  }
  0x1c   : > { %371 = vmatpush1.bf16.msra.mxu0 %v988_v12  ;;  %904 = vmatpush3.bf16.msra.mxu1 %v993_v14  ;;  %v1019_v42 = vld [vmem:[%s1377_s3 + $0xb0] sm:$0xff]   ;;  %v1022_v45 = vld [vmem:[%s1377_s3 + $0xb8] sm:$0xff]   ;;  %v252_v52 = vrot.slane %v247_v49, %v251_v48  ;;  %v256_v53 = vrot.slane %v247_v49, %v255_v50  ;;  %v260_v54 = vrot.slane %v247_v49, %v259_v51  ;;  %v830_v11 = vld [vmem:[%s1378_s4] ss:$0 sm:$0xff]  ;;  %p1024_p11 = scmp.ne.s32.totalorder %s1333_s6, %s1023_s11  ;;  %s1027_s13 = sshll.u32 %s1090_s22, 4  ;;  %s1028_s13 = int_to_ptr.vmem [resolvable:$false] %s1027_s13 }
  0x1d   : > { %372 = vmatprep.subr.bf16.mxu0 %v990_v13  ;;  %905 = vmatprep.subr.bf16.mxu1 %v1087_v2  ;;  %s1029_s14 = scalar_lea.vmem %s1028_s13, 256  ;;  %p1030_p0 = scmp.lt.s32.totalorder %s1333_s6, %s1028_s13 }
  0x1e   : > { %p1025_p12 = pnand %p1024_p11, %p1159_p5  ;;  %p1031_p1 = scmp.lt.s32.totalorder %s1029_s14, %s1023_s11 }
  0x20   : > { %373 = vmatpush1.bf16.msra.mxu0 %v992_v15  ;;  %906 = vmatpush3.bf16.msra.mxu1 %v997_v17  ;;  %p1026_p13 = pneg %p1025_p12  ;;  %p1032_p2 = por %p1031_p1, %p1030_p0 }
  0x21   : > { %374 = vmatprep.subr.bf16.mxu0 %v994_v16  ;;  %907 = vmatprep.subr.bf16.mxu1 %v1087_v2 }
  0x22   : > { %p1033_p3 = pnand %p1032_p2, %p1026_p13 }
  0x24   : > { %375 = vmatpush1.bf16.msra.mxu0 %v996_v18  ;;  %908 = vmatpush3.bf16.msra.mxu1 %v998_v21 }
  0x25   : > { %866 = vmatprep.subr.bf16.mxu0 %v999_v20  ;;  %913 = vmatprep.subr.bf16.mxu1 %v1087_v2 }
  0x27   : > { %828 = vmatmul.mubr.msk.bf16.vlgmr.msra.gmra.mrb[0].mxu0 %vm360_vm1, %v222_v22  ;;  %910 = vmatmul.mubr.msk.bf16.vlgmr.msra.gmra.mrb[0].mxu1 %vm360_vm1, %v222_v22 }
  0x28   : > { %867 = vmatpush3.bf16.msra.mxu0 %v1000_v23  ;;  %914 = vmatpush3.bf16.msra.mxu1 %v1001_v25 }
  0x29   : > { %868 = vmatprep.subr.bf16.mxu0 %v1002_v24  ;;  %929 = vmatprep.mubr.msk.bf16.mxu1 %vm1089_vm0, %v1087_v2 }
  0x2a   : > { %915 = vmatprep.subr.bf16.mxu1 %v1087_v2 }
  0x2c   : > { %869 = vmatpush3.bf16.msra.mxu0 %v1003_v26  ;;  %916 = vmatpush3.bf16.msra.mxu1 %v1004_v28 }
  0x2d   : > { %870 = vmatprep.subr.bf16.mxu0 %v1005_v27  ;;  %917 = vmatprep.subr.bf16.mxu1 %v1087_v2 }
  0x30   : > { %871 = vmatpush3.bf16.msra.mxu0 %v1006_v29  ;;  %918 = vmatpush3.bf16.msra.mxu1 %v1007_v30 }
  0x31   : > { %872 = vmatprep.subr.bf16.mxu0 %v1008_v31  ;;  %919 = vmatprep.subr.bf16.mxu1 %v1087_v2 }
  0x34   : > { %873 = vmatpush3.bf16.msra.mxu0 %v1009_v32  ;;  %920 = vmatpush3.bf16.msra.mxu1 %v1010_v34 }
  0x35   : > { %874 = vmatprep.subr.bf16.mxu0 %v1011_v33  ;;  %921 = vmatprep.subr.bf16.mxu1 %v1087_v2 }
  0x38   : > { %875 = vmatpush3.bf16.msra.mxu0 %v1012_v35  ;;  %922 = vmatpush3.bf16.msra.mxu1 %v1013_v37 }
  0x39   : > { %876 = vmatprep.subr.bf16.mxu0 %v1014_v36  ;;  %923 = vmatprep.subr.bf16.mxu1 %v1087_v2 }
  0x3c   : > { %877 = vmatpush3.bf16.msra.mxu0 %v1015_v38  ;;  %924 = vmatpush3.bf16.msra.mxu1 %v1016_v39 }
  0x3d   : > { %878 = vmatprep.subr.bf16.mxu0 %v1017_v40  ;;  %925 = vmatprep.subr.bf16.mxu1 %v1087_v2 }
  0x40   : > { %879 = vmatpush3.bf16.msra.mxu0 %v1018_v41  ;;  %926 = vmatpush3.bf16.msra.mxu1 %v1019_v42 }
  0x41   : > { %880 = vmatprep.subr.bf16.mxu0 %v1020_v43  ;;  %927 = vmatprep.subr.bf16.mxu1 %v1087_v2 }
  0x44   : > { %881 = vmatpush3.bf16.msra.mxu0 %v1021_v44  ;;  %928 = vmatpush3.bf16.msra.mxu1 %v1022_v45 }
  0xfa   : > { %v398_v55 = vpop.f32.mrb[0].mxu0  ;;  %v439_v60 = vpop.f32.mrb[0].mxu1 }
  0xfb   : > { %v399_v56 = vadd.f32 %v398_v55, %v252_v52  ;;  %v400_v57 = vpop.f32.mrb[1].mxu0  ;;  %v440_v63 = vadd.f32 %v439_v60, %v260_v54  ;;  %v911_v0 = vpop.f32.mrb[1].mxu1 }
  0xfc   : > { %v401_v58 = vadd.f32 %v400_v57, %v256_v53  ;;  %v402_v59 = vpop.f32.mrb[2].mxu0  ;;  %v442_v2 = vpop.f32.mrb[2].mxu1 }
  0xfd   : > { %v445_v61 = vmax.f32 %v399_v56, 0.0  ;;  %v403_v62 = vpop.f32.mrb[3].mxu0  ;;  %v447_v3 = vmax.f32 %v440_v63, 0.0  ;;  %v912_v4 = vpop.f32.mrb[3].mxu1 }
  0xfe   : > { %v446_v1 = vmax.f32 %v401_v58, 0.0 }
  0xff   : > { %v448_v6 = vpack.c.bf16 %v445_v61, %v445_v61  ;;  %v450_v7 = vpack.c.bf16 %v447_v3, %v447_v3 }
 0x100   : > { %v449_v5 = vpack.c.bf16 %v446_v1, %v446_v1 }
 0x101   : > { %930 = vmatmul.mubr.bf16.vlgmr.msra.gmra.mrb[4].mxu1 %v450_v7 }
 0x102   : > { %682 = vmatprep.mubr.bf16.mxu0 %v449_v5 }
 0x103   : > { %683 = vmatmul.mubr.bf16.vlgmr.msra.gmra.mrb[4].mxu0 %v448_v6 }
 0x1d4   : > { %v724_v9 = vpop.f32.mrb[4].mxu1 }
 0x1d5   : > { %v931_v12 = vpop.f32.mrb[5].mxu1 }
 0x1d6   : > { %v882_v8 = vpop.f32.mrb[4].mxu0  ;;  %v727_v15 = vpop.f32.mrb[6].mxu1 }
 0x1d7   : > { %v883_v10 = vpop.f32.mrb[5].mxu0  ;;  %v932_v17 = vpop.f32.mrb[7].mxu1 }
 0x1d8   : > { %v884_v13 = vadd.f32 %v883_v10, %v882_v8  ;;  %v885_v14 = vpop.f32.mrb[6].mxu0 }
 0x1d9   : > { %v886_v16 = vpop.f32.mrb[7].mxu0 }
 0x1da   : > { %v685_v18 = vadd.f32 %v884_v13, %v830_v11 }
 0x1dc   : > { %v725_v19 = vadd.f32 %v724_v9, %v685_v18 }
 0x1de   : > { %730 = vst.msk [vmem:[%s215_s30] sm:$0xff] %vm360_vm1, %v725_v19 }
 0x1df   : > { %1036 = shalt.err (!%p1033_p3)
}
 0x1e0   : > { %s1037_s12 = scalar_lea.hbm %s1331_s9, 128  ;;  %s1041_s17 = scalar_lea.hbm %s1379_s5, 256 }
 0x1e1   : > { %p1038_p4 = scmp.ne.s32.totalorder %s1331_s9, %s1037_s12  ;;  %p1042_p9 = scmp.lt.u32.totalorder %s1331_s9, %s1379_s5 }
 0x1e2   : > { %p1043_p10 = scmp.lt.u32.totalorder %s1041_s17, %s1037_s12  ;;  %p1045_p12 = scmp.lt.u32.totalorder %s1037_s12, %s1331_s9 }
 0x1e3   : > { %p1039_p7 = pnand %p1038_p4, %p1159_p5 }
 0x1e4   : > { %p1044_p11 = por %p1043_p10, %p1042_p9 }
 0x1e5   : > { %p1040_p8 = pneg %p1039_p7 }
 0x1e6   : > { %p1046_p13 = por %p1045_p12, %p1044_p11 }
 0x1e8   : > { %p1047_p0 = pnand %p1046_p13, %p1040_p8 }
 0x1ea   : > { %1050 = shalt.err (!%p1047_p0)
}
 0x1eb   : > { %933 = dma.vmem_to_hbm [thread:$0]  (%p1159_p5), %s1333_s6, 128, %s1331_s9, %s732_s10  }
 0x1ec PF: > { %p939_p1 = scmp.ge.s32.totalorder %s1085_s21, 2  ;;  %s757_s25 = sand.u32 1, %s1073_s18  }
 0x1ed   : > { %s758_s30 = scalar_lea.sflag [#allocation3], %s757_s25 }
 0x1ee   : > { %p936_p2 = pnand %p939_p1, %p1163_p6 }
 0x1f0   : > { %1068 = dma.done.wait (!%p936_p2), %s758_s30, 128  }
 0x1f1   : > { %1070 = vsyncadd (!%p936_p2), %s758_s30, 4294967168  ;;  %p15_p3 = scmp.ge.s32.totalorder %s1146_s24, 4   ;;  %s1382_s18 = smov %s1077_s19 }
 0x1f2   : > { %s1383_s19 = smov %s1081_s20  ;;  %s1384_s20 = smov %s1157_s27 }
 0x1f3   : > { %s1385_s21 = smov %s1146_s24  ;;  %17 = sbr.rel (!%p15_p3) target bundleno = 3 (0x3), region = 75 }
 0x1fa   :  { %763 = vsyncpa [#allocation3], 1 }
 0x1fb   :  { %765 = vsyncpa [#allocation3 + $0x1], 1 }

</bundles_post_ra>
